<compile_context>
chip_gen: v7x
topology: tpu7x:2x2x1
jax: 0.10.0
libtpu: 0.0.40
codegen_flags: <defaults>
</compile_context>

<pallas_src>
import functools

import jax
import jax.numpy as jnp
from jax.experimental import pallas as pl
from jax.experimental.pallas import tpu as pltpu

EPS = 1e-5


def _round_up(x, m):
    return ((x + m - 1) // m) * m


def _mlp_kernel(x_ref, gamma_ref, beta_ref,
                w1g_ref, w1u_ref, b1g_ref, b1u_ref, w2_ref, b2_ref,
                o_ref, y_ref, acc_ref, *, inv_d):
    """Grid = (row_tiles, ffn_tiles).  y_ref caches the LayerNorm output across
    the FFN (reduction) axis; acc_ref accumulates the fc2 partial products."""
    k = pl.program_id(1)

    # ---- LayerNorm (f32, one-pass stats), computed once per row tile ----
    @pl.when(k == 0)
    def _():
        x = x_ref[...].astype(jnp.float32)                    # (tm, Dp)
        mu = jnp.sum(x, axis=-1, keepdims=True) * inv_d        # real-D mean
        msq = jnp.sum(x * x, axis=-1, keepdims=True) * inv_d   # real-D E[x^2]
        var = msq - mu * mu
        xn = (x - mu) * jax.lax.rsqrt(var + EPS)
        # gamma/beta are zero in padded lanes -> padded y columns are exactly 0
        y = xn * gamma_ref[...] + beta_ref[...]
        y_ref[...] = y.astype(jnp.bfloat16)
        acc_ref[...] = jnp.zeros_like(acc_ref)

    y = y_ref[...]                                             # (tm, Dp) bf16

    # ---- fc1 (gate & up halves) + swiglu, for this FFN tile ----
    a = jnp.dot(y, w1g_ref[...], preferred_element_type=jnp.float32) + b1g_ref[...]
    g = jnp.dot(y, w1u_ref[...], preferred_element_type=jnp.float32) + b1u_ref[...]
    act = (a * jax.nn.sigmoid(a)) * g                          # f32 elementwise (VPU/EUP)

    # ---- fc2 partial product, accumulated in f32 ----
    acc_ref[...] += jnp.dot(act.astype(jnp.bfloat16), w2_ref[...],
                            preferred_element_type=jnp.float32)

    # ---- finalize: bias add + store ----
    @pl.when(k == pl.num_programs(1) - 1)
    def _():
        o_ref[...] = (acc_ref[...] + b2_ref[...]).astype(o_ref.dtype)


def prepare_mlp_params(gamma, beta, w1, b1, w2, b2, *, compute_dtype=jnp.bfloat16):
    """One-time parameter prep: split W1 into gate/up, transpose to row-major,
    pad hidden/ffn dims to multiples of 128, and cast weights to bf16."""
    D = gamma.shape[0]
    H = w1.shape[0] // 2
    Dp = _round_up(D, 128)
    Hp = _round_up(H, 128)

    def pad2(a, r, c):
        return jnp.pad(a, ((0, r - a.shape[0]), (0, c - a.shape[1])))

    def pad_row(v, n):
        return jnp.pad(v, (0, n - v.shape[0])).reshape(1, n).astype(jnp.float32)

    w1g = pad2(jnp.transpose(w1[:H, :]), Dp, Hp).astype(compute_dtype)   # (Dp, Hp)
    w1u = pad2(jnp.transpose(w1[H:, :]), Dp, Hp).astype(compute_dtype)   # (Dp, Hp)
    w2t = pad2(jnp.transpose(w2), Hp, Dp).astype(compute_dtype)          # (Hp, Dp)

    return dict(
        D=D, H=H, Dp=Dp, Hp=Hp,
        gamma=pad_row(gamma, Dp), beta=pad_row(beta, Dp),
        w1g=w1g, w1u=w1u,
        b1g=pad_row(b1[:H], Hp), b1u=pad_row(b1[H:], Hp),
        w2=w2t, b2=pad_row(b2, Dp),
    )


def mlp_pallas(x, params, *, tm=256, tn=512):
    """x: (..., D).  params: output of prepare_mlp_params."""
    D, Dp, Hp = params["D"], params["Dp"], params["Hp"]

    orig_shape = x.shape
    x2 = x.reshape(-1, D)
    N = x2.shape[0]

    # Row tile: as large as requested, shrunk for tiny inputs; rows padded to a multiple.
    tm_eff = min(tm, _round_up(N, 8))
    Np = _round_up(N, tm_eff)

    # FFN tile: largest multiple of 128 that divides Hp and is <= tn.
    tn_eff = min(tn, Hp)
    while Hp % tn_eff != 0:
        tn_eff -= 128

    x2p = jnp.pad(x2, ((0, Np - N), (0, Dp - D)))

    kernel = functools.partial(_mlp_kernel, inv_d=float(1.0 / D))

    grid = (Np // tm_eff, Hp // tn_eff)

    out = pl.pallas_call(
        kernel,
        out_shape=jax.ShapeDtypeStruct((Np, Dp), x.dtype),
        grid_spec=pltpu.PrefetchScalarGridSpec(
            num_scalar_prefetch=0,
            grid=grid,
            in_specs=[
                pl.BlockSpec((tm_eff, Dp), lambda i, k: (i, 0)),   # x tile
                pl.BlockSpec((1, Dp), lambda i, k: (0, 0)),        # gamma
                pl.BlockSpec((1, Dp), lambda i, k: (0, 0)),        # beta
                pl.BlockSpec((Dp, tn_eff), lambda i, k: (0, k)),   # W1 gate (bf16)
                pl.BlockSpec((Dp, tn_eff), lambda i, k: (0, k)),   # W1 up   (bf16)
                pl.BlockSpec((1, tn_eff), lambda i, k: (0, k)),    # b1 gate
                pl.BlockSpec((1, tn_eff), lambda i, k: (0, k)),    # b1 up
                pl.BlockSpec((tn_eff, Dp), lambda i, k: (k, 0)),   # W2      (bf16)
                pl.BlockSpec((1, Dp), lambda i, k: (0, 0)),        # b2
            ],
            out_specs=pl.BlockSpec((tm_eff, Dp), lambda i, k: (i, 0)),
            scratch_shapes=[
                pltpu.VMEM((tm_eff, Dp), jnp.bfloat16),            # cached LN output
                pltpu.VMEM((tm_eff, Dp), jnp.float32),             # fc2 accumulator
            ],
        ),
        compiler_params=pltpu.CompilerParams(
            dimension_semantics=("parallel", "arbitrary"),
            vmem_limit_bytes=56 * 1024 * 1024,
        ),
    )(x2p, params["gamma"], params["beta"],
      params["w1g"], params["w1u"], params["b1g"], params["b1u"],
      params["w2"], params["b2"])

    return out[:N, :D].reshape(orig_shape)


def mlp_reference(x, gamma, beta, w1, b1, w2, b2):
    """Pure-JAX (f32) reference for correctness checking."""
    H = w1.shape[0] // 2
    xf = x.astype(jnp.float32)
    mu = jnp.mean(xf, axis=-1, keepdims=True)
    var = jnp.mean((xf - mu) ** 2, axis=-1, keepdims=True)
    y = (xf - mu) * jax.lax.rsqrt(var + EPS) * gamma + beta
    h = y @ w1.T + b1
    a, g = h[..., :H], h[..., H:]
    act = jax.nn.silu(a) * g
    return (act @ w2.T + b2).astype(x.dtype)


if __name__ == "__main__":
    # Small shapes consistent with the module: in_dim=32, hidden_dim=64.
    batch, seq, in_dim, hidden_dim = 2, 8, 32, 64

    key = jax.random.PRNGKey(0)
    kx, k1, k2, kb1, kb2 = jax.random.split(key, 5)

    x = jax.random.normal(kx, (batch, seq, in_dim), dtype=jnp.float32)

    gamma = jnp.ones((in_dim,), jnp.float32)
    beta = jnp.zeros((in_dim,), jnp.float32)
    w1 = jax.random.normal(k1, (2 * hidden_dim, in_dim), jnp.float32) * 0.05
    b1 = jax.random.normal(kb1, (2 * hidden_dim,), jnp.float32) * 0.01
    w2 = jax.random.normal(k2, (in_dim, hidden_dim), jnp.float32) * 0.05
    b2 = jax.random.normal(kb2, (in_dim,), jnp.float32) * 0.01

    # One-time parameter preparation (transpose / split / pad / bf16 cast).
    params = prepare_mlp_params(gamma, beta, w1, b1, w2, b2)

    out = mlp_pallas(x, params)
    out = jax.block_until_ready(out)

    ref = mlp_reference(x, gamma, beta, w1, b1, w2, b2)
    assert out.shape == x.shape
    # bf16 matmul operands (f32 accumulation) -> slightly looser tolerance than pure f32.
    assert jnp.allclose(out, ref, atol=2e-2, rtol=2e-2), "mismatch vs reference"

    print("KERNEL_OK")
</pallas_src>

<mosaic_0001>
module attributes {stable_mosaic.version = 11 : i64} {
  func.func @_mlp_kernel(%arg0: i32, %arg1: i32, %arg2: memref<16x128xf32, #tpu.memory_space<vmem>>, %arg3: memref<1x128xf32, #tpu.memory_space<vmem>>, %arg4: memref<1x128xf32, #tpu.memory_space<vmem>>, %arg5: memref<128x128xbf16, #tpu.memory_space<vmem>>, %arg6: memref<128x128xbf16, #tpu.memory_space<vmem>>, %arg7: memref<1x128xf32, #tpu.memory_space<vmem>>, %arg8: memref<1x128xf32, #tpu.memory_space<vmem>>, %arg9: memref<128x128xbf16, #tpu.memory_space<vmem>>, %arg10: memref<1x128xf32, #tpu.memory_space<vmem>>, %arg11: memref<16x128xf32, #tpu.memory_space<vmem>>, %arg12: memref<16x128xbf16, #tpu.memory_space<vmem>>, %arg13: memref<16x128xf32, #tpu.memory_space<vmem>>) attributes {dimension_semantics = [#tpu.dimension_semantics<parallel>, #tpu.dimension_semantics<arbitrary>], iteration_bounds = array<i64: 1, 1>, scalar_prefetch = 0 : i64, scratch_operands = 2 : i64, tpu.core_type = #tpu.core_type<tc>, window_params = [{transform_indices = @transform_0, window_bounds = array<i64: 16, 128>}, {pipeline_mode = #tpu.pipeline_mode<synchronous>, transform_indices = @transform_1, window_bounds = array<i64: 1, 128>}, {pipeline_mode = #tpu.pipeline_mode<synchronous>, transform_indices = @transform_2, window_bounds = array<i64: 1, 128>}, {transform_indices = @transform_3, window_bounds = array<i64: 128, 128>}, {transform_indices = @transform_4, window_bounds = array<i64: 128, 128>}, {transform_indices = @transform_5, window_bounds = array<i64: 1, 128>}, {transform_indices = @transform_6, window_bounds = array<i64: 1, 128>}, {transform_indices = @transform_7, window_bounds = array<i64: 128, 128>}, {pipeline_mode = #tpu.pipeline_mode<synchronous>, transform_indices = @transform_8, window_bounds = array<i64: 1, 128>}, {transform_indices = @transform_9, window_bounds = array<i64: 16, 128>}]} {
    %c0_i32 = arith.constant 0 : i32
    %0 = arith.cmpi eq, %arg1, %c0_i32 : i32
    %1 = arith.extui %0 : i1 to i32
    %c0_i32_0 = arith.constant 0 : i32
    %2 = arith.cmpi ne, %1, %c0_i32_0 : i32
    scf.if %2 {
      %c0_21 = arith.constant 0 : index
      %c0_22 = arith.constant 0 : index
      %30 = vector.load %arg2[%c0_21, %c0_22] : memref<16x128xf32, #tpu.memory_space<vmem>>, vector<16x128xf32>
      %cst_23 = arith.constant dense<0.000000e+00> : vector<16xf32>
      %31 = vector.multi_reduction <add>, %30, %cst_23 [1] : vector<16x128xf32> to vector<16xf32>
      %32 = vector.shape_cast %31 : vector<16xf32> to vector<16x1xf32>
      %cst_24 = arith.constant 3.125000e-02 : f32
      %33 = vector.broadcast %cst_24 : f32 to vector<16x1xf32>
      %34 = arith.mulf %32, %33 : vector<16x1xf32>
      %35 = arith.mulf %30, %30 : vector<16x128xf32>
      %cst_25 = arith.constant dense<0.000000e+00> : vector<16xf32>
      %36 = vector.multi_reduction <add>, %35, %cst_25 [1] : vector<16x128xf32> to vector<16xf32>
      %37 = vector.shape_cast %36 : vector<16xf32> to vector<16x1xf32>
      %cst_26 = arith.constant 3.125000e-02 : f32
      %38 = vector.broadcast %cst_26 : f32 to vector<16x1xf32>
      %39 = arith.mulf %37, %38 : vector<16x1xf32>
      %40 = arith.mulf %34, %34 : vector<16x1xf32>
      %41 = arith.subf %39, %40 : vector<16x1xf32>
      %42 = vector.broadcast %34 : vector<16x1xf32> to vector<16x128xf32>
      %43 = arith.subf %30, %42 : vector<16x128xf32>
      %cst_27 = arith.constant 9.99999974E-6 : f32
      %44 = vector.broadcast %cst_27 : f32 to vector<16x1xf32>
      %45 = arith.addf %41, %44 : vector<16x1xf32>
      %46 = math.rsqrt %45 : vector<16x1xf32>
      %47 = vector.broadcast %46 : vector<16x1xf32> to vector<16x128xf32>
      %48 = arith.mulf %43, %47 : vector<16x128xf32>
      %c0_28 = arith.constant 0 : index
      %c0_29 = arith.constant 0 : index
      %49 = vector.load %arg3[%c0_28, %c0_29] : memref<1x128xf32, #tpu.memory_space<vmem>>, vector<1x128xf32>
      %50 = vector.broadcast %49 : vector<1x128xf32> to vector<16x128xf32>
      %51 = arith.mulf %48, %50 : vector<16x128xf32>
      %c0_30 = arith.constant 0 : index
      %c0_31 = arith.constant 0 : index
      %52 = vector.load %arg4[%c0_30, %c0_31] : memref<1x128xf32, #tpu.memory_space<vmem>>, vector<1x128xf32>
      %53 = vector.broadcast %52 : vector<1x128xf32> to vector<16x128xf32>
      %54 = arith.addf %51, %53 : vector<16x128xf32>
      %55 = arith.truncf %54 : vector<16x128xf32> to vector<16x128xbf16>
      %c0_32 = arith.constant 0 : index
      %c0_33 = arith.constant 0 : index
      %56 = vector.load %arg12[%c0_32, %c0_33] : memref<16x128xbf16, #tpu.memory_space<vmem>>, vector<16x128xbf16>
      tpu.vector_store %arg12[%c0_32, %c0_33], %55 {strides = array<i32>} : memref<16x128xbf16, #tpu.memory_space<vmem>>, vector<16x128xbf16>,
      %cst_34 = arith.constant 0.000000e+00 : f32
      %57 = vector.broadcast %cst_34 : f32 to vector<16x128xf32>
      %c0_35 = arith.constant 0 : index
      %c0_36 = arith.constant 0 : index
      %58 = vector.load %arg13[%c0_35, %c0_36] : memref<16x128xf32, #tpu.memory_space<vmem>>, vector<16x128xf32>
      tpu.vector_store %arg13[%c0_35, %c0_36], %57 {strides = array<i32>} : memref<16x128xf32, #tpu.memory_space<vmem>>, vector<16x128xf32>,
    } else {
    }
    %c0 = arith.constant 0 : index
    %c0_1 = arith.constant 0 : index
    %3 = vector.load %arg12[%c0, %c0_1] : memref<16x128xbf16, #tpu.memory_space<vmem>>, vector<16x128xbf16>
    %c0_2 = arith.constant 0 : index
    %c0_3 = arith.constant 0 : index
    %4 = vector.load %arg5[%c0_2, %c0_3] : memref<128x128xbf16, #tpu.memory_space<vmem>>, vector<128x128xbf16>
    %cst = arith.constant dense<0.000000e+00> : vector<16x128xf32>
    %5 = tpu.matmul %3, %4, %cst {dimension_numbers = #tpu.dot_dimension_numbers<[1], [0], [0], [1], [0, 0, 1, 1], [], []>} : vector<16x128xbf16>, vector<128x128xbf16>, vector<16x128xf32> -> vector<16x128xf32>
    %c0_4 = arith.constant 0 : index
    %c0_5 = arith.constant 0 : index
    %6 = vector.load %arg7[%c0_4, %c0_5] : memref<1x128xf32, #tpu.memory_space<vmem>>, vector<1x128xf32>
    %7 = vector.broadcast %6 : vector<1x128xf32> to vector<16x128xf32>
    %8 = arith.addf %5, %7 : vector<16x128xf32>
    %c0_6 = arith.constant 0 : index
    %c0_7 = arith.constant 0 : index
    %9 = vector.load %arg6[%c0_6, %c0_7] : memref<128x128xbf16, #tpu.memory_space<vmem>>, vector<128x128xbf16>
    %cst_8 = arith.constant dense<0.000000e+00> : vector<16x128xf32>
    %10 = tpu.matmul %3, %9, %cst_8 {dimension_numbers = #tpu.dot_dimension_numbers<[1], [0], [0], [1], [0, 0, 1, 1], [], []>} : vector<16x128xbf16>, vector<128x128xbf16>, vector<16x128xf32> -> vector<16x128xf32>
    %c0_9 = arith.constant 0 : index
    %c0_10 = arith.constant 0 : index
    %11 = vector.load %arg8[%c0_9, %c0_10] : memref<1x128xf32, #tpu.memory_space<vmem>>, vector<1x128xf32>
    %12 = vector.broadcast %11 : vector<1x128xf32> to vector<16x128xf32>
    %13 = arith.addf %10, %12 : vector<16x128xf32>
    %14 = arith.negf %8 : vector<16x128xf32>
    %15 = math.exp %14 : vector<16x128xf32>
    %cst_11 = arith.constant 1.000000e+00 : f32
    %16 = vector.broadcast %cst_11 : f32 to vector<16x128xf32>
    %17 = arith.addf %16, %15 : vector<16x128xf32>
    %18 = arith.divf %16, %17 : vector<16x128xf32>
    %19 = arith.mulf %8, %18 : vector<16x128xf32>
    %20 = arith.mulf %19, %13 : vector<16x128xf32>
    %c0_12 = arith.constant 0 : index
    %c0_13 = arith.constant 0 : index
    %21 = vector.load %arg13[%c0_12, %c0_13] : memref<16x128xf32, #tpu.memory_space<vmem>>, vector<16x128xf32>
    %22 = arith.truncf %20 : vector<16x128xf32> to vector<16x128xbf16>
    %c0_14 = arith.constant 0 : index
    %c0_15 = arith.constant 0 : index
    %23 = vector.load %arg9[%c0_14, %c0_15] : memref<128x128xbf16, #tpu.memory_space<vmem>>, vector<128x128xbf16>
    %cst_16 = arith.constant dense<0.000000e+00> : vector<16x128xf32>
    %24 = tpu.matmul %22, %23, %cst_16 {dimension_numbers = #tpu.dot_dimension_numbers<[1], [0], [0], [1], [0, 0, 1, 1], [], []>} : vector<16x128xbf16>, vector<128x128xbf16>, vector<16x128xf32> -> vector<16x128xf32>
    %25 = arith.addf %21, %24 : vector<16x128xf32>
    %c0_17 = arith.constant 0 : index
    %c0_18 = arith.constant 0 : index
    %26 = vector.load %arg13[%c0_17, %c0_18] : memref<16x128xf32, #tpu.memory_space<vmem>>, vector<16x128xf32>
    tpu.vector_store %arg13[%c0_17, %c0_18], %25 {strides = array<i32>} : memref<16x128xf32, #tpu.memory_space<vmem>>, vector<16x128xf32>,
    %c0_i32_19 = arith.constant 0 : i32
    %27 = arith.cmpi eq, %arg1, %c0_i32_19 : i32
    %28 = arith.extui %27 : i1 to i32
    %c0_i32_20 = arith.constant 0 : i32
    %29 = arith.cmpi ne, %28, %c0_i32_20 : i32
    scf.if %29 {
      %c0_21 = arith.constant 0 : index
      %c0_22 = arith.constant 0 : index
      %30 = vector.load %arg13[%c0_21, %c0_22] : memref<16x128xf32, #tpu.memory_space<vmem>>, vector<16x128xf32>
      %c0_23 = arith.constant 0 : index
      %c0_24 = arith.constant 0 : index
      %31 = vector.load %arg10[%c0_23, %c0_24] : memref<1x128xf32, #tpu.memory_space<vmem>>, vector<1x128xf32>
      %32 = vector.broadcast %31 : vector<1x128xf32> to vector<16x128xf32>
      %33 = arith.addf %30, %32 : vector<16x128xf32>
      %c0_25 = arith.constant 0 : index
      %c0_26 = arith.constant 0 : index
      %34 = vector.load %arg11[%c0_25, %c0_26] : memref<16x128xf32, #tpu.memory_space<vmem>>, vector<16x128xf32>
      tpu.vector_store %arg11[%c0_25, %c0_26], %33 {strides = array<i32>} : memref<16x128xf32, #tpu.memory_space<vmem>>, vector<16x128xf32>,
    } else {
    }
    return
  }
  func.func @transform_0(%arg0: i32, %arg1: i32) -> (i32, i32) {
    %c0_i32 = arith.constant 0 : i32
    %c0_i32_0 = arith.constant 0 : i32
    return %arg0, %c0_i32 : i32, i32
  }
  func.func @transform_1(%arg0: i32, %arg1: i32) -> (i32, i32) {
    %c0_i32 = arith.constant 0 : i32
    %c0_i32_0 = arith.constant 0 : i32
    %c0_i32_1 = arith.constant 0 : i32
    return %c0_i32, %c0_i32_0 : i32, i32
  }
  func.func @transform_2(%arg0: i32, %arg1: i32) -> (i32, i32) {
    %c0_i32 = arith.constant 0 : i32
    %c0_i32_0 = arith.constant 0 : i32
    %c0_i32_1 = arith.constant 0 : i32
    return %c0_i32, %c0_i32_0 : i32, i32
  }
  func.func @transform_3(%arg0: i32, %arg1: i32) -> (i32, i32) {
    %c0_i32 = arith.constant 0 : i32
    %c0_i32_0 = arith.constant 0 : i32
    return %c0_i32, %arg1 : i32, i32
  }
  func.func @transform_4(%arg0: i32, %arg1: i32) -> (i32, i32) {
    %c0_i32 = arith.constant 0 : i32
    %c0_i32_0 = arith.constant 0 : i32
    return %c0_i32, %arg1 : i32, i32
  }
  func.func @transform_5(%arg0: i32, %arg1: i32) -> (i32, i32) {
    %c0_i32 = arith.constant 0 : i32
    %c0_i32_0 = arith.constant 0 : i32
    return %c0_i32, %arg1 : i32, i32
  }
  func.func @transform_6(%arg0: i32, %arg1: i32) -> (i32, i32) {
    %c0_i32 = arith.constant 0 : i32
    %c0_i32_0 = arith.constant 0 : i32
    return %c0_i32, %arg1 : i32, i32
  }
  func.func @transform_7(%arg0: i32, %arg1: i32) -> (i32, i32) {
    %c0_i32 = arith.constant 0 : i32
    %c0_i32_0 = arith.constant 0 : i32
    return %arg1, %c0_i32 : i32, i32
  }
  func.func @transform_8(%arg0: i32, %arg1: i32) -> (i32, i32) {
    %c0_i32 = arith.constant 0 : i32
    %c0_i32_0 = arith.constant 0 : i32
    %c0_i32_1 = arith.constant 0 : i32
    return %c0_i32, %c0_i32_0 : i32, i32
  }
  func.func @transform_9(%arg0: i32, %arg1: i32) -> (i32, i32) {
    %c0_i32 = arith.constant 0 : i32
    %c0_i32_0 = arith.constant 0 : i32
    return %arg0, %c0_i32 : i32, i32
  }
}

</mosaic_0001>

<bundles_post_ra>
// kernel: tpu_custom_call.1
= control target key start
LH: loop header
LB: loop body
LE: loop exit
PB: predicated region body
PF: predicated region fallthrough
CT: control target
= control target key end

     0   :  { %14 = vsyncpa [#allocation5], 0  ;;  %s1014_s0 = inlined_call_operand.hbm [shape: f32[16,128], index: 0, kind: input, shape index: {}]   ;;  %s1015_s1 = inlined_call_operand.vmem [shape: f32[1,128], index: 1, kind: input, shape index: {}]   ;;  %s1016_s2 = inlined_call_operand.vmem [shape: f32[1,128], index: 2, kind: input, shape index: {}]   ;;  %s1017_s3 = inlined_call_operand.hbm [shape: bf16[128,128], index: 3, kind: input, shape index: {}]   ;;  %s1018_s4 = inlined_call_operand.hbm [shape: bf16[128,128], index: 4, kind: input, shape index: {}]   ;;  %s1019_s5 = inlined_call_operand.vmem [shape: f32[1,128], index: 5, kind: input, shape index: {}]   ;;  %s1020_s6 = inlined_call_operand.vmem [shape: f32[1,128], index: 6, kind: input, shape index: {}]   ;;  %s1021_s7 = inlined_call_operand.hbm [shape: bf16[128,128], index: 7, kind: input, shape index: {}]   ;;  %s1022_s8 = inlined_call_operand.vmem [shape: f32[1,128], index: 8, kind: input, shape index: {}]   ;;  %s1023_s9 = inlined_call_operand.hbm [shape: f32[16,128], index: 9, kind: output, shape index: {}]  }
   0x1   :  { %15 = vsyncpa [#allocation8], 0 }
   0x2   :  { %16 = vsyncpa [#allocation11], 0 }
   0x3   :  { %17 = vsyncpa [#allocation6], 0  ;;  %s814_s30 = smov [#allocation7]   ;;  %s696_s13 = scalar_lea.hbm %s1017_s3, 1024 }
   0x4   :  { %s39_s10 = sshll.u32 %s814_s30, 4  ;;  %p697_p0 = scmp.ne.s32.totalorder %s1017_s3, %s696_s13  ;;  %s40_s10 = int_to_ptr.vmem [resolvable:$true] %s39_s10 }
   0x5   :  { %p700_p1 = scmp.lt.u32.totalorder %s696_s13, %s1017_s3 }
   0x7   :  { %p702_p2 = pnand %p700_p1, %p697_p0 }
   0x9   :  { %705 = shalt.err (!%p702_p2)
}
   0xa   :  { %s706_s18 = scalar_lea.vmem %s40_s10, 1024  ;;  %p711_p4 = scmp.lt.s32.totalorder %s40_s10, %s40_s10 }
   0xb   :  { %p707_p3 = scmp.ne.s32.totalorder %s40_s10, %s706_s18  ;;  %p712_p5 = scmp.lt.s32.totalorder %s706_s18, %s706_s18 }
   0xd   :  { %p713_p6 = por %p712_p5, %p711_p4 }
   0xf   :  { %p714_p7 = pnand %p713_p6, %p707_p3 }
  0x11   :  { %717 = shalt.err (!%p714_p7)
}
  0x12   :  { %s815_s19 = smov 64   ;;  %s816_s20 = smov 4  }
  0x13   :  { %45 = dma.hbm_to_vmem [thread:$0]  %s1017_s3, 1024, %s40_s10, [#allocation8], %s815_s19, %s815_s19, %s816_s20  }
  0x14   :  { %s817_s23 = smov [#allocation4]   ;;  %s718_s27 = scalar_lea.hbm %s1014_s0, 256 }
  0x15   :  { %s23_s24 = sshll.u32 %s817_s23, 4  ;;  %p719_p8 = scmp.ne.s32.totalorder %s1014_s0, %s718_s27  ;;  %s24_s24 = int_to_ptr.vmem [resolvable:$true] %s23_s24 }
  0x16   :  { %p722_p9 = scmp.lt.u32.totalorder %s718_s27, %s1014_s0 }
  0x18   :  { %p724_p10 = pnand %p722_p9, %p719_p8 }
  0x1a   :  { %727 = shalt.err (!%p724_p10)
}
  0x1b   :  { %s728_s12 = scalar_lea.vmem %s24_s24, 256  ;;  %p733_p12 = scmp.lt.s32.totalorder %s24_s24, %s24_s24 }
  0x1c   :  { %p729_p11 = scmp.ne.s32.totalorder %s24_s24, %s728_s12  ;;  %p734_p13 = scmp.lt.s32.totalorder %s728_s12, %s728_s12 }
  0x1e   :  { %p735_p0 = por %p734_p13, %p733_p12 }
  0x20   :  { %p736_p1 = pnand %p735_p0, %p729_p11 }
  0x22   :  { %739 = shalt.err (!%p736_p1)
}
  0x23   :  { %s818_s3 = smov 128   ;;  %s819_s10 = smov 8  }
  0x24   :  { %29 = dma.hbm_to_vmem [thread:$0]  %s1014_s0, 256, %s24_s24, [#allocation5], %s818_s3, %s818_s3, %s819_s10  }
  0x25   :  { %s820_s15 = smov [#allocation9]   ;;  %s821_s17 = smov [#allocation10]  }
  0x26   :  { %s51_s16 = sshll.u32 %s820_s15, 4  ;;  %s67_s18 = sshll.u32 %s821_s17, 4  ;;  %s52_s16 = int_to_ptr.vmem [resolvable:$true] %s51_s16  ;;  %s905_s18 = int_to_ptr.vmem [resolvable:$true] %s67_s18 }
  0x27   :  { %s740_s23 = scalar_lea.hbm %s1018_s4, 1024 }
  0x28   :  { %p741_p2 = scmp.ne.s32.totalorder %s1018_s4, %s740_s23  ;;  %p744_p3 = scmp.lt.u32.totalorder %s740_s23, %s1018_s4 }
  0x2a   :  { %p746_p4 = pnand %p744_p3, %p741_p2 }
  0x2c   :  { %749 = shalt.err (!%p746_p4)
}
  0x2d   :  { %s750_s0 = scalar_lea.vmem %s52_s16, 1024  ;;  %p755_p6 = scmp.lt.s32.totalorder %s52_s16, %s52_s16 }
  0x2e   :  { %p751_p5 = scmp.ne.s32.totalorder %s52_s16, %s750_s0  ;;  %p756_p7 = scmp.lt.s32.totalorder %s750_s0, %s750_s0 }
  0x30   :  { %p757_p8 = por %p756_p7, %p755_p6 }
  0x32   :  { %p758_p9 = pnand %p757_p8, %p751_p5 }
  0x34   :  { %761 = shalt.err (!%p758_p9)
}
  0x35   :  { %57 = dma.hbm_to_vmem [thread:$0]  %s1018_s4, 1024, %s52_s16, [#allocation8], %s815_s19, %s815_s19, %s816_s20  }
  0x36   :  { %s762_s12 = scalar_lea.hbm %s1021_s7, 1024 }
  0x37   :  { %p763_p10 = scmp.ne.s32.totalorder %s1021_s7, %s762_s12  ;;  %p766_p11 = scmp.lt.u32.totalorder %s762_s12, %s1021_s7 }
  0x39   :  { %p768_p12 = pnand %p766_p11, %p763_p10 }
  0x3b   :  { %771 = shalt.err (!%p768_p12)
}
  0x3c   :  { %s772_s21 = scalar_lea.vmem %s905_s18, 1024  ;;  %p777_p0 = scmp.lt.s32.totalorder %s905_s18, %s905_s18 }
  0x3d   :  { %p773_p13 = scmp.ne.s32.totalorder %s905_s18, %s772_s21  ;;  %p778_p1 = scmp.lt.s32.totalorder %s772_s21, %s772_s21 }
  0x3f   :  { %p779_p2 = por %p778_p1, %p777_p0 }
  0x41   :  { %p780_p3 = pnand %p779_p2, %p773_p13 }
  0x43   :  { %783 = shalt.err (!%p780_p3)
}
  0x44   :  { %73 = dma.hbm_to_vmem [thread:$0]  %s1021_s7, 1024, %s905_s18, [#allocation11], %s815_s19, %s815_s19, %s816_s20  }
  0x45   :  { %806 = dma.done.wait [#allocation5], 256  }
  0x46   :  { %807 = vsyncadd [#allocation5], 4294967040 }
  0x47   :  { %808 = dma.done.wait [#allocation8], 2048  }
  0x48   :  { %809 = vsyncadd [#allocation8], 4294965248 }
  0x49   :  { %810 = dma.done.wait [#allocation11], 1024  }
  0x4a   :  { %811 = vsyncadd [#allocation11], 4294966272  ;;  %v822_v0 = vmov 0.0   ;;  %v944_v1 = vld [vmem:[#allocation4] sm:$0xff]  ;;  %v946_v2 = vld [vmem:[#allocation4 + $0x8] sm:$0xff]  ;;  %vm823_vm0 = vmmov 0  }
  0x4b   :  { %589 = vmatprep.subr.bf16.mxu0 %v822_v0  ;;  %609 = vmatprep.subr.bf16.mxu1 %v822_v0  ;;  %v101_v3 = vmul.f32 %v944_v1, %v944_v1  ;;  %v102_v4 = vmul.f32 %v946_v2, %v946_v2  ;;  %v660_v5 = vld [vmem:[#allocation7] sm:$0xff]   ;;  %v662_v7 = vld [vmem:[#allocation7 + $0x8] sm:$0xff]   ;;  %v664_v9 = vld [vmem:[#allocation7 + $0x10] sm:$0xff]   ;;  %s824_s26 = smov [#allocation12]  }
  0x4c   :  { %95 = vadd.xlane.f32.xlu0 %v944_v1  ;;  %v661_v6 = vld [vmem:[#allocation9] sm:$0xff]   ;;  %590 = vmatpush3.bf16.msra.mxu0 %v660_v5  ;;  %v663_v8 = vld [vmem:[#allocation9 + $0x8] sm:$0xff]   ;;  %v665_v10 = vld [vmem:[#allocation9 + $0x10] sm:$0xff]   ;;  %s517_s27 = sshll.u32 %s824_s26, 4  ;;  %s518_s27 = int_to_ptr.vmem [resolvable:$true] %s517_s27 }
  0x4d   :  { %103 = vadd.xlane.f32.xlu1 %v101_v3  ;;  %610 = vmatpush3.bf16.msra.mxu1 %v661_v6  ;;  %v666_v11 = vld [vmem:[#allocation7 + $0x18] sm:$0xff]   ;;  %v668_v13 = vld [vmem:[#allocation7 + $0x20] sm:$0xff]   ;;  %v670_v15 = vld [vmem:[#allocation7 + $0x28] sm:$0xff]   ;;  %p789_p5 = scmp.lt.s32.totalorder %s518_s27, %s518_s27 }
  0x4e   :  { %591 = vmatprep.subr.bf16.mxu0 %v822_v0  ;;  %611 = vmatprep.subr.bf16.mxu1 %v822_v0  ;;  %v667_v12 = vld [vmem:[#allocation9 + $0x18] sm:$0xff]   ;;  %v669_v14 = vld [vmem:[#allocation9 + $0x20] sm:$0xff]   ;;  %v671_v16 = vld [vmem:[#allocation9 + $0x28] sm:$0xff]  }
  0x4f   :  { %605 = vmatprep.mubr.msk.bf16.mxu0 %vm823_vm0, %v822_v0  ;;  %625 = vmatprep.mubr.msk.bf16.mxu1 %vm823_vm0, %v822_v0  ;;  %v672_v17 = vld [vmem:[#allocation7 + $0x30] sm:$0xff]   ;;  %v674_v19 = vld [vmem:[#allocation7 + $0x38] sm:$0xff]   ;;  %v676_v48 = vld [vmem:[#allocation10] sm:$0xff]  }
  0x50   :  { %97 = vadd.xlane.f32.xlu0 %v946_v2  ;;  %592 = vmatpush3.bf16.msra.mxu0 %v662_v7  ;;  %v673_v18 = vld [vmem:[#allocation9 + $0x30] sm:$0xff]   ;;  %v675_v20 = vld [vmem:[#allocation9 + $0x38] sm:$0xff]   ;;  %v677_v49 = vld [vmem:[#allocation10 + $0x8] sm:$0xff]  }
  0x51   :  { %105 = vadd.xlane.f32.xlu1 %v102_v4  ;;  %612 = vmatpush3.bf16.msra.mxu1 %v663_v8  ;;  %v531_v38 = vld [vmem:[%s1015_s1] ss:$0 sm:$0xff]  ;;  %v679_v51 = vld [vmem:[#allocation10 + $0x18] sm:$0xff]   ;;  %v680_v52 = vld [vmem:[#allocation10 + $0x20] sm:$0xff]  }
  0x52   :  { %593 = vmatprep.subr.bf16.mxu0 %v822_v0  ;;  %613 = vmatprep.subr.bf16.mxu1 %v822_v0  ;;  %v532_v43 = vld [vmem:[%s1016_s2] ss:$0 sm:$0xff]  ;;  %v681_v53 = vld [vmem:[#allocation10 + $0x28] sm:$0xff]   ;;  %v683_v55 = vld [vmem:[#allocation10 + $0x38] sm:$0xff]  }
  0x53   :  { %v678_v50 = vld [vmem:[#allocation10 + $0x10] sm:$0xff]  }
  0x54   :  { %594 = vmatpush3.bf16.msra.mxu0 %v664_v9  ;;  %v682_v54 = vld [vmem:[#allocation10 + $0x30] sm:$0xff]  }
  0x55   :  { %614 = vmatpush3.bf16.msra.mxu1 %v665_v10  ;;  %595 = vmatprep.subr.bf16.mxu0 %v822_v0  ;;  %v533_v56 = vld [vmem:[%s1019_s5] ss:$0 sm:$0xff] }
  0x56   :  { %615 = vmatprep.subr.bf16.mxu1 %v822_v0  ;;  %v542_v9 = vld [vmem:[%s1020_s6] ss:$0 sm:$0xff]  ;;  %s784_s6 = scalar_lea.vmem %s518_s27, 256 }
  0x57   :  { %p785_p4 = scmp.ne.s32.totalorder %s518_s27, %s784_s6  ;;  %p790_p6 = scmp.lt.s32.totalorder %s784_s6, %s784_s6 }
  0x58   :  { %596 = vmatpush3.bf16.msra.mxu0 %v666_v11 }
  0x59   :  { %616 = vmatpush3.bf16.msra.mxu1 %v667_v12  ;;  %597 = vmatprep.subr.bf16.mxu0 %v822_v0  ;;  %p791_p7 = por %p790_p6, %p789_p5 }
  0x5a   :  { %617 = vmatprep.subr.bf16.mxu1 %v822_v0 }
  0x5b   :  { %p792_p8 = pnand %p791_p7, %p785_p4 }
  0x5c   :  { %598 = vmatpush3.bf16.msra.mxu0 %v668_v13 }
  0x5d   :  { %618 = vmatpush3.bf16.msra.mxu1 %v669_v14  ;;  %599 = vmatprep.subr.bf16.mxu0 %v822_v0 }
  0x5e   :  { %619 = vmatprep.subr.bf16.mxu1 %v822_v0 }
  0x60   :  { %600 = vmatpush3.bf16.msra.mxu0 %v670_v15 }
  0x61   :  { %620 = vmatpush3.bf16.msra.mxu1 %v671_v16  ;;  %601 = vmatprep.subr.bf16.mxu0 %v822_v0 }
  0x62   :  { %621 = vmatprep.subr.bf16.mxu1 %v822_v0 }
  0x64   :  { %602 = vmatpush3.bf16.msra.mxu0 %v672_v17 }
  0x65   :  { %622 = vmatpush3.bf16.msra.mxu1 %v673_v18  ;;  %603 = vmatprep.subr.bf16.mxu0 %v822_v0 }
  0x66   :  { %623 = vmatprep.subr.bf16.mxu1 %v822_v0 }
  0x68   :  { %604 = vmatpush3.bf16.msra.mxu0 %v674_v19  ;;  %v561_v19 = vld [vmem:[%s1022_s8] ss:$0 sm:$0xff] }
  0x69   :  { %624 = vmatpush3.bf16.msra.mxu1 %v675_v20  ;;  %629 = vmatprep.subr.bf16.mxu0 %v822_v0 }
  0xd9   :  { %v96_v21 = vpop.xlane.xlu0 %95 }
  0xda   :  { %v99_v22 = vmul.f32 0.03125, %v96_v21  ;;  %v104_v23 = vpop.xlane.xlu1 %103 }
  0xdb   :  { %v107_v25 = vmul.f32 0.03125, %v104_v23 }
  0xdc   :  { %v109_v24 = vmul.f32 %v99_v22, %v99_v22  ;;  %v113_v35 = vsub.f32 %v944_v1, %v99_v22 }
  0xdd   :  { %v98_v26 = vpop.xlane.xlu0 %97 }
  0xde   :  { %v111_v27 = vsub.f32 %v107_v25, %v109_v24  ;;  %v100_v28 = vmul.f32 0.03125, %v98_v26  ;;  %v106_v29 = vpop.xlane.xlu1 %105 }
  0xdf   :  { %v108_v32 = vmul.f32 0.03125, %v106_v29 }
  0xe0   :  { %v115_v30 = vadd.f32 1e-05, %v111_v27  ;;  %v110_v31 = vmul.f32 %v100_v28, %v100_v28  ;;  %v114_v39 = vsub.f32 %v946_v2, %v100_v28 }
  0xe2   :  { %684 = vrsqrt.f32 %v115_v30  ;;  %v112_v33 = vsub.f32 %v108_v32, %v110_v31 }
  0xe4   :  { %v116_v34 = vadd.f32 1e-05, %v112_v33 }
  0xe6   :  { %686 = vrsqrt.f32 %v116_v34 }
  0xec   :  { %v685_v36 = vpop.eup %684 }
  0xed   :  { %v119_v37 = vmul.f32 %v685_v36, %v113_v35 }
  0xef   :  { %v128_v42 = vmul.f32 %v531_v38, %v119_v37 }
  0xf0   :  { %v687_v40 = vpop.eup %686 }
  0xf1   :  { %v120_v41 = vmul.f32 %v687_v40, %v114_v39  ;;  %v137_v45 = vadd.f32 %v532_v43, %v128_v42 }
  0xf3   :  { %v129_v44 = vmul.f32 %v531_v38, %v120_v41 }
  0xf5   :  { %v138_v46 = vadd.f32 %v532_v43, %v129_v44 }
  0xf7   :  { %v139_v47 = vpack.c.bf16 %v138_v46, %v137_v45 }
  0xf9   :  { %606 = vmatmul.mubr.bf16.vlgmr.msra.gmra.mrb[0].mxu0 %v139_v47  ;;  %626 = vmatmul.mubr.bf16.vlgmr.msra.gmra.mrb[0].mxu1 %v139_v47 }
  0xfa   :  { %645 = vmatprep.mubr.msk.bf16.mxu0 %vm823_vm0, %v822_v0  ;;  %630 = vmatpush3.bf16.msra.mxu0 %v676_v48 }
  0xfb   :  { %631 = vmatprep.subr.bf16.mxu0 %v822_v0 }
  0xfe   :  { %632 = vmatpush3.bf16.msra.mxu0 %v677_v49 }
  0xff   :  { %633 = vmatprep.subr.bf16.mxu0 %v822_v0 }
 0x102   :  { %634 = vmatpush3.bf16.msra.mxu0 %v678_v50 }
 0x103   :  { %635 = vmatprep.subr.bf16.mxu0 %v822_v0 }
 0x106   :  { %636 = vmatpush3.bf16.msra.mxu0 %v679_v51 }
 0x107   :  { %637 = vmatprep.subr.bf16.mxu0 %v822_v0 }
 0x10a   :  { %638 = vmatpush3.bf16.msra.mxu0 %v680_v52 }
 0x10b   :  { %639 = vmatprep.subr.bf16.mxu0 %v822_v0 }
 0x10e   :  { %640 = vmatpush3.bf16.msra.mxu0 %v681_v53 }
 0x10f   :  { %641 = vmatprep.subr.bf16.mxu0 %v822_v0 }
 0x112   :  { %642 = vmatpush3.bf16.msra.mxu0 %v682_v54 }
 0x113   :  { %643 = vmatprep.subr.bf16.mxu0 %v822_v0 }
 0x116   :  { %644 = vmatpush3.bf16.msra.mxu0 %v683_v55 }
 0x1cc   :  { %v249_v57 = vpop.f32.mrb[0].mxu0  ;;  %v361_v58 = vpop.f32.mrb[0].mxu1 }
 0x1cd   :  { %v250_v59 = vadd.f32 %v533_v56, %v249_v57  ;;  %v607_v60 = vpop.f32.mrb[1].mxu0  ;;  %v627_v61 = vpop.f32.mrb[1].mxu1  ;;  %v362_v12 = vadd.f32 %v542_v9, %v361_v58 }
 0x1ce   :  { %v252_v62 = vpop.f32.mrb[2].mxu0  ;;  %v364_v63 = vpop.f32.mrb[2].mxu1 }
 0x1cf   :  { %v551_v1 = vmul.f32 -1.442695, %v250_v59  ;;  %v253_v2 = vadd.f32 %v533_v56, %v252_v62  ;;  %v608_v3 = vpop.f32.mrb[3].mxu0  ;;  %v628_v4 = vpop.f32.mrb[3].mxu1  ;;  %v365_v16 = vadd.f32 %v542_v9, %v364_v63 }
 0x1d1   :  { %688 = vpow2.f32 %v551_v1  ;;  %v552_v5 = vmul.f32 -1.442695, %v253_v2 }
 0x1d3   :  { %690 = vpow2.f32 %v552_v5 }
 0x1db   :  { %v689_v0 = vpop.eup %688 }
 0x1dc   :  { %v374_v6 = vadd.f32 1.0, %v689_v0 }
 0x1dd   :  { %v691_v7 = vpop.eup %690 }
 0x1de   :  { %692 = vrcp.f32 %v374_v6  ;;  %v375_v8 = vadd.f32 1.0, %v691_v7 }
 0x1e0   :  { %694 = vrcp.f32 %v375_v8 }
 0x1e8   :  { %v693_v10 = vpop.eup %692 }
 0x1e9   :  { %v380_v11 = vmul.f32 %v693_v10, %v250_v59 }
 0x1ea   :  { %v695_v13 = vpop.eup %694 }
 0x1eb   :  { %v382_v14 = vmul.f32 %v380_v11, %v362_v12  ;;  %v381_v15 = vmul.f32 %v695_v13, %v253_v2 }
 0x1ed   :  { %v383_v17 = vmul.f32 %v381_v15, %v365_v16 }
 0x1ef   :  { %v386_v18 = vpack.c.bf16 %v383_v17, %v382_v14 }
 0x1f1   :  { %646 = vmatmul.mubr.bf16.vlgmr.msra.gmra.mrb[4].mxu0 %v386_v18 }
 0x2c4   :  { %v485_v20 = vpop.f32.mrb[4].mxu0 }
 0x2c5   :  { %v508_v21 = vadd.f32 %v561_v19, %v485_v20  ;;  %v647_v22 = vpop.f32.mrb[5].mxu0 }
 0x2c6   :  { %v488_v23 = vpop.f32.mrb[6].mxu0 }
 0x2c7   :  { %510 = vst [vmem:[#allocation12] sm:$0xff] %v508_v21  ;;  %v509_v24 = vadd.f32 %v561_v19, %v488_v23  ;;  %v648_v25 = vpop.f32.mrb[7].mxu0 }
 0x2c9   :  { %511 = vst [vmem:[#allocation12 + $0x8] sm:$0xff] %v509_v24 }
 0x2ca   :  { %795 = shalt.err (!%p792_p8)
}
 0x2cb   :  { %s796_s0 = scalar_lea.hbm %s1023_s9, 256 }
 0x2cc   :  { %p797_p9 = scmp.ne.s32.totalorder %s1023_s9, %s796_s0  ;;  %p800_p10 = scmp.lt.u32.totalorder %s796_s0, %s1023_s9 }
 0x2ce   :  { %p802_p11 = pnand %p800_p10, %p797_p9 }
 0x2d0   :  { %805 = shalt.err (!%p802_p11)
}
 0x2d1   :  { %523 = dma.vmem_to_hbm [thread:$0]  %s518_s27, 256, %s1023_s9, [#allocation6], %s818_s3, %s818_s3, %s819_s10  }
 0x2d2   :  { %812 = dma.done.wait [#allocation6], 256  }
 0x2d3   :  { %813 = vsyncadd [#allocation6], 4294967040 }
 0x2d4   :  { %527 = vsyncpa [#allocation5], 1 }
 0x2d5   :  { %528 = vsyncpa [#allocation8], 1 }
 0x2d6   :  { %529 = vsyncpa [#allocation11], 1 }
 0x2d7   :  { %530 = vsyncpa [#allocation6], 1 }

</bundles_post_ra>
